<compile_context>
chip_gen: v7x
topology: tpu7x:2x2x1
jax: 0.10.0
libtpu: 0.0.40
codegen_flags: <defaults>
</compile_context>

<pallas_src>
import numpy as np
import jax
import jax.numpy as jnp
from jax.experimental import pallas as pl
from jax.experimental.pallas import tpu as pltpu

FILTER_SIZES = [1, 2, 5]
HIDDEN_LAYER_DIMENSION = 100
NUM_WORDS = 8                      # sequence length (height of the NCHW input)

LANES = 128                        # lane width everything is padded to
SHIFT_BLOCK = 16                   # lanes per time block (>= number of filters)
NEG = -1.0e30                      # additive mask for invalid max-pool positions


def _round_up(n, m):
    return ((n + m - 1) // m) * m


def kimcnn_kernel(x_ref, wfull_ref, mask_ref, w1t_ref, b1_ref, w2t_ref, b2_ref, out_ref):
    # 1) All six convolutions at all NUM_WORDS window positions in ONE lane-dense MXU
    #    matmul: (TB, NW*D) @ (NW*D, 128); lane 16*t + f = filter f at window start t.
    conv = jnp.dot(x_ref[...], wfull_ref[...], preferred_element_type=jnp.float32)
    #    mask folds in the conv biases (max(c)+b == max(c+b)) and -1e30 at invalid t.
    conv = conv + mask_ref[...]

    # 2) Lane-parallel max-pool over the window axis: three XLU roll-and-max steps fold
    #    lanes {f, f+16, ..., f+112} so every lane of the group holds the group max.
    pooled = conv
    for shift in (64, 32, 16):
        pooled = jnp.maximum(pooled, pltpu.roll(pooled, shift, axis=1))

    # 3) fc_layer + clamp(min=0), then output_layer — 128-lane matmuls, lane-dense store.
    fc = jnp.maximum(
        jnp.dot(pooled.astype(w1t_ref.dtype), w1t_ref[...],
                preferred_element_type=jnp.float32) + b1_ref[...],
        0.0)
    out = jnp.dot(fc.astype(w2t_ref.dtype), w2t_ref[...],
                  preferred_element_type=jnp.float32) + b2_ref[...]
    out_ref[...] = out.astype(out_ref.dtype)


def init_params(key, d_in, d_out):
    """Deterministic parameter init matching the PyTorch module's shapes."""
    keys = jax.random.split(key, 16)
    params = {}
    conv_w, conv_b = [], []
    k_i = 0
    for fs in FILTER_SIZES + FILTER_SIZES:          # 1,2,5, 1,2,5 (torch.cat order)
        bound = 1.0 / jnp.sqrt(float(fs * d_in))
        conv_w.append(jax.random.uniform(keys[k_i], (fs, d_in), jnp.float32, -bound, bound))
        conv_b.append(jax.random.uniform(keys[k_i + 1], (), jnp.float32, -bound, bound))
        k_i += 2
    params["conv_w"] = conv_w                       # list of (fs, d_in)
    params["conv_b"] = jnp.stack(conv_b)            # (6,)
    b1 = 1.0 / jnp.sqrt(6.0)
    params["w1"] = jax.random.uniform(keys[12], (HIDDEN_LAYER_DIMENSION, 6), jnp.float32, -b1, b1)
    params["b1"] = jax.random.uniform(keys[13], (HIDDEN_LAYER_DIMENSION,), jnp.float32, -b1, b1)
    b2 = 1.0 / jnp.sqrt(float(HIDDEN_LAYER_DIMENSION))
    params["w2"] = jax.random.uniform(keys[14], (d_out, HIDDEN_LAYER_DIMENSION), jnp.float32, -b2, b2)
    params["b2"] = jax.random.uniform(keys[15], (d_out,), jnp.float32, -b2, b2)
    return params


def prepare_params(params, d_in, d_out, *, mxu_dtype=jnp.bfloat16):
    """One-time packing of PyTorch-layout params into lane-dense kernel operands (numpy)."""
    filters = FILTER_SIZES + FILTER_SIZES
    n_f = len(filters)
    hid = params["w1"].shape[0]
    D = d_in
    assert n_f <= SHIFT_BLOCK and SHIFT_BLOCK * NUM_WORDS <= LANES
    assert hid <= LANES and d_out <= LANES
    assert max(filters) <= NUM_WORDS

    conv_w = [np.asarray(w, np.float32) for w in params["conv_w"]]
    conv_b = np.asarray(params["conv_b"], np.float32)

    # Full-conv matrix: column 16*t + f holds filter f placed at rows (t+s)*D + d.
    wfull = np.zeros((NUM_WORDS * D, LANES), np.float32)
    # Additive mask: conv bias at valid window starts, -1e30 at invalid ones.
    mask = np.zeros((1, LANES), np.float32)
    for f, (fs, w) in enumerate(zip(filters, conv_w)):
        for t in range(NUM_WORDS):
            lane = SHIFT_BLOCK * t + f
            if t <= NUM_WORDS - fs:
                for s in range(fs):
                    wfull[(t + s) * D:(t + s + 1) * D, lane] = w[s]
                mask[0, lane] = conv_b[f]
            else:
                mask[0, lane] = NEG

    w1t = np.zeros((LANES, LANES), np.float32)
    w1t[:n_f, :hid] = np.asarray(params["w1"], np.float32).T
    b1 = np.zeros((1, LANES), np.float32)
    b1[0, :hid] = np.asarray(params["b1"], np.float32)
    w2t = np.zeros((LANES, LANES), np.float32)
    w2t[:hid, :d_out] = np.asarray(params["w2"], np.float32).T
    b2 = np.zeros((1, LANES), np.float32)
    b2[0, :d_out] = np.asarray(params["b2"], np.float32)

    return {
        "wfull": jnp.asarray(wfull, mxu_dtype),
        "mask": jnp.asarray(mask, jnp.float32),
        "w1t": jnp.asarray(w1t, mxu_dtype),
        "b1": jnp.asarray(b1, jnp.float32),
        "w2t": jnp.asarray(w2t, mxu_dtype),
        "b2": jnp.asarray(b2, jnp.float32),
        "d_in": d_in,
        "d_out": d_out,
    }


def kimcnn_forward(x_nchw, packed, *, tb=None, out_dtype=jnp.bfloat16):
    """x_nchw: (B, 1, NUM_WORDS, d_in) float32 — mirrors the PyTorch forward."""
    B, C, NW, D = x_nchw.shape
    assert C == 1 and NW == NUM_WORDS and D == packed["d_in"]
    K = NW * D
    d_out = packed["d_out"]
    mxu_dtype = packed["wfull"].dtype

    # Batch tile: rows are lane-dense and tiny, so VMEM is never the limit — keep at
    # least 2 grid steps (when B allows) so v7x's two TensorCores both get work, and
    # cap at 1024 rows to amortize the ~0.35 us/step overhead on v5e/v6e.
    if tb is None:
        tb = min(1024, _round_up(max(1, (B + 1) // 2), 8))
    tb = max(8, _round_up(min(tb, B), 8))
    b_pad = _round_up(B, tb)
    grid = (b_pad // tb,)

    # Lane-dense flattened input (padded batch rows are sliced off after the call).
    x2 = x_nchw.reshape(B, K)
    if b_pad != B:
        x2 = jnp.concatenate([x2, jnp.zeros((b_pad - B, K), x2.dtype)], axis=0)
    x2 = x2.astype(mxu_dtype)

    out = pl.pallas_call(
        kimcnn_kernel,
        out_shape=jax.ShapeDtypeStruct((b_pad, LANES), out_dtype),
        grid=grid,
        in_specs=[
            pl.BlockSpec((tb, K), lambda i: (i, 0)),          # x: batch-tiled, lane-dense
            pl.BlockSpec((K, LANES), lambda i: (0, 0)),       # full-conv weight matrix
            pl.BlockSpec((1, LANES), lambda i: (0, 0)),       # conv bias + validity mask
            pl.BlockSpec((LANES, LANES), lambda i: (0, 0)),   # fc1 weight (transposed)
            pl.BlockSpec((1, LANES), lambda i: (0, 0)),       # fc1 bias
            pl.BlockSpec((LANES, LANES), lambda i: (0, 0)),   # fc2 weight (transposed)
            pl.BlockSpec((1, LANES), lambda i: (0, 0)),       # fc2 bias
        ],
        out_specs=pl.BlockSpec((tb, LANES), lambda i: (i, 0)),
        compiler_params=pltpu.CompilerParams(
            dimension_semantics=("parallel",),
        ),
    )(x2, packed["wfull"], packed["mask"], packed["w1t"], packed["b1"],
      packed["w2t"], packed["b2"])

    out = out[:B, :d_out].astype(jnp.float32)
    return jnp.squeeze(out)   # matches PyTorch .squeeze()


def kimcnn_reference(x_nchw, params):
    """Pure-JAX f32 reference for correctness checking."""
    B, _, NW, D = x_nchw.shape
    x = x_nchw.reshape(B, NW, D)
    pooled = []
    for w, b in zip(params["conv_w"], params["conv_b"]):
        fs = w.shape[0]
        L = NW - fs + 1
        conv = jnp.zeros((B, L), jnp.float32)
        for i in range(fs):
            conv = conv + x[:, i:i + L, :] @ w[i]
        pooled.append(jnp.max(conv + b, axis=1))
    cat = jnp.stack(pooled, axis=1)                               # (B, 6)
    fc = jnp.maximum(cat @ params["w1"].T + params["b1"], 0.0)
    return jnp.squeeze(fc @ params["w2"].T + params["b2"])


if __name__ == "__main__":
    B, d_in, d_out = 32, 16, 3
    key = jax.random.PRNGKey(0)
    k_x, k_p = jax.random.split(key)
    x = jax.random.normal(k_x, (B, 1, NUM_WORDS, d_in), jnp.float32)
    params = init_params(k_p, d_in, d_out)

    packed = prepare_params(params, d_in, d_out)      # one-time packing (bf16 MXU operands)

    # Default tb heuristic -> tb=16 here: grid of 2 batch tiles, exercising the
    # BlockSpec pipelining and the "parallel" batch axis.
    out = kimcnn_forward(x, packed)
    jax.block_until_ready(out)

    ref = kimcnn_reference(x, params)
    assert out.shape == ref.shape, (out.shape, ref.shape)
    # Tolerance loosened for bf16 MXU operands + bf16 output store.
    assert jnp.allclose(out, ref, atol=5e-2, rtol=5e-2), (
        float(jnp.max(jnp.abs(out - ref))), out, ref)
    print("KERNEL_OK")
</pallas_src>

<mosaic_0001>
module attributes {stable_mosaic.version = 11 : i64} {
  func.func @kimcnn_kernel(%arg0: i32, %arg1: memref<16x128xbf16, #tpu.memory_space<vmem>>, %arg2: memref<128x128xbf16, #tpu.memory_space<vmem>>, %arg3: memref<1x128xf32, #tpu.memory_space<vmem>>, %arg4: memref<128x128xbf16, #tpu.memory_space<vmem>>, %arg5: memref<1x128xf32, #tpu.memory_space<vmem>>, %arg6: memref<128x128xbf16, #tpu.memory_space<vmem>>, %arg7: memref<1x128xf32, #tpu.memory_space<vmem>>, %arg8: memref<16x128xbf16, #tpu.memory_space<vmem>>) attributes {dimension_semantics = [#tpu.dimension_semantics<parallel>], iteration_bounds = array<i64: 2>, scalar_prefetch = 0 : i64, scratch_operands = 0 : i64, tpu.core_type = #tpu.core_type<tc>, window_params = [{transform_indices = @transform_0, window_bounds = array<i64: 16, 128>}, {pipeline_mode = #tpu.pipeline_mode<synchronous>, transform_indices = @transform_1, window_bounds = array<i64: 128, 128>}, {pipeline_mode = #tpu.pipeline_mode<synchronous>, transform_indices = @transform_2, window_bounds = array<i64: 1, 128>}, {pipeline_mode = #tpu.pipeline_mode<synchronous>, transform_indices = @transform_3, window_bounds = array<i64: 128, 128>}, {pipeline_mode = #tpu.pipeline_mode<synchronous>, transform_indices = @transform_4, window_bounds = array<i64: 1, 128>}, {pipeline_mode = #tpu.pipeline_mode<synchronous>, transform_indices = @transform_5, window_bounds = array<i64: 128, 128>}, {pipeline_mode = #tpu.pipeline_mode<synchronous>, transform_indices = @transform_6, window_bounds = array<i64: 1, 128>}, {transform_indices = @transform_7, window_bounds = array<i64: 16, 128>}]} {
    %c0 = arith.constant 0 : index
    %c0_0 = arith.constant 0 : index
    %0 = vector.load %arg1[%c0, %c0_0] : memref<16x128xbf16, #tpu.memory_space<vmem>>, vector<16x128xbf16>
    %c0_1 = arith.constant 0 : index
    %c0_2 = arith.constant 0 : index
    %1 = vector.load %arg2[%c0_1, %c0_2] : memref<128x128xbf16, #tpu.memory_space<vmem>>, vector<128x128xbf16>
    %cst = arith.constant dense<0.000000e+00> : vector<16x128xf32>
    %2 = tpu.matmul %0, %1, %cst {dimension_numbers = #tpu.dot_dimension_numbers<[1], [0], [0], [1], [0, 0, 1, 1], [], []>} : vector<16x128xbf16>, vector<128x128xbf16>, vector<16x128xf32> -> vector<16x128xf32>
    %c0_3 = arith.constant 0 : index
    %c0_4 = arith.constant 0 : index
    %3 = vector.load %arg3[%c0_3, %c0_4] : memref<1x128xf32, #tpu.memory_space<vmem>>, vector<1x128xf32>
    %4 = vector.broadcast %3 : vector<1x128xf32> to vector<16x128xf32>
    %5 = arith.addf %2, %4 : vector<16x128xf32>
    %c64_i32 = arith.constant 64 : i32
    %6 = tpu.dynamic_rotate %5 by %c64_i32 dim 1 : vector<16x128xf32>, i32 -> vector<16x128xf32>
    %7 = arith.maximumf %5, %6 : vector<16x128xf32>
    %c32_i32 = arith.constant 32 : i32
    %8 = tpu.dynamic_rotate %7 by %c32_i32 dim 1 : vector<16x128xf32>, i32 -> vector<16x128xf32>
    %9 = arith.maximumf %7, %8 : vector<16x128xf32>
    %c16_i32 = arith.constant 16 : i32
    %10 = tpu.dynamic_rotate %9 by %c16_i32 dim 1 : vector<16x128xf32>, i32 -> vector<16x128xf32>
    %11 = arith.maximumf %9, %10 : vector<16x128xf32>
    %12 = arith.truncf %11 : vector<16x128xf32> to vector<16x128xbf16>
    %c0_5 = arith.constant 0 : index
    %c0_6 = arith.constant 0 : index
    %13 = vector.load %arg4[%c0_5, %c0_6] : memref<128x128xbf16, #tpu.memory_space<vmem>>, vector<128x128xbf16>
    %cst_7 = arith.constant dense<0.000000e+00> : vector<16x128xf32>
    %14 = tpu.matmul %12, %13, %cst_7 {dimension_numbers = #tpu.dot_dimension_numbers<[1], [0], [0], [1], [0, 0, 1, 1], [], []>} : vector<16x128xbf16>, vector<128x128xbf16>, vector<16x128xf32> -> vector<16x128xf32>
    %c0_8 = arith.constant 0 : index
    %c0_9 = arith.constant 0 : index
    %15 = vector.load %arg5[%c0_8, %c0_9] : memref<1x128xf32, #tpu.memory_space<vmem>>, vector<1x128xf32>
    %16 = vector.broadcast %15 : vector<1x128xf32> to vector<16x128xf32>
    %17 = arith.addf %14, %16 : vector<16x128xf32>
    %cst_10 = arith.constant 0.000000e+00 : f32
    %18 = vector.broadcast %cst_10 : f32 to vector<16x128xf32>
    %19 = arith.maximumf %17, %18 : vector<16x128xf32>
    %20 = arith.truncf %19 : vector<16x128xf32> to vector<16x128xbf16>
    %c0_11 = arith.constant 0 : index
    %c0_12 = arith.constant 0 : index
    %21 = vector.load %arg6[%c0_11, %c0_12] : memref<128x128xbf16, #tpu.memory_space<vmem>>, vector<128x128xbf16>
    %cst_13 = arith.constant dense<0.000000e+00> : vector<16x128xf32>
    %22 = tpu.matmul %20, %21, %cst_13 {dimension_numbers = #tpu.dot_dimension_numbers<[1], [0], [0], [1], [0, 0, 1, 1], [], []>} : vector<16x128xbf16>, vector<128x128xbf16>, vector<16x128xf32> -> vector<16x128xf32>
    %c0_14 = arith.constant 0 : index
    %c0_15 = arith.constant 0 : index
    %23 = vector.load %arg7[%c0_14, %c0_15] : memref<1x128xf32, #tpu.memory_space<vmem>>, vector<1x128xf32>
    %24 = vector.broadcast %23 : vector<1x128xf32> to vector<16x128xf32>
    %25 = arith.addf %22, %24 : vector<16x128xf32>
    %26 = arith.truncf %25 : vector<16x128xf32> to vector<16x128xbf16>
    %c0_16 = arith.constant 0 : index
    %c0_17 = arith.constant 0 : index
    %27 = vector.load %arg8[%c0_16, %c0_17] : memref<16x128xbf16, #tpu.memory_space<vmem>>, vector<16x128xbf16>
    tpu.vector_store %arg8[%c0_16, %c0_17], %26 {strides = array<i32>} : memref<16x128xbf16, #tpu.memory_space<vmem>>, vector<16x128xbf16>,
    return
  }
  func.func @transform_0(%arg0: i32) -> (i32, i32) {
    %c0_i32 = arith.constant 0 : i32
    %c0_i32_0 = arith.constant 0 : i32
    return %arg0, %c0_i32 : i32, i32
  }
  func.func @transform_1(%arg0: i32) -> (i32, i32) {
    %c0_i32 = arith.constant 0 : i32
    %c0_i32_0 = arith.constant 0 : i32
    %c0_i32_1 = arith.constant 0 : i32
    return %c0_i32, %c0_i32_0 : i32, i32
  }
  func.func @transform_2(%arg0: i32) -> (i32, i32) {
    %c0_i32 = arith.constant 0 : i32
    %c0_i32_0 = arith.constant 0 : i32
    %c0_i32_1 = arith.constant 0 : i32
    return %c0_i32, %c0_i32_0 : i32, i32
  }
  func.func @transform_3(%arg0: i32) -> (i32, i32) {
    %c0_i32 = arith.constant 0 : i32
    %c0_i32_0 = arith.constant 0 : i32
    %c0_i32_1 = arith.constant 0 : i32
    return %c0_i32, %c0_i32_0 : i32, i32
  }
  func.func @transform_4(%arg0: i32) -> (i32, i32) {
    %c0_i32 = arith.constant 0 : i32
    %c0_i32_0 = arith.constant 0 : i32
    %c0_i32_1 = arith.constant 0 : i32
    return %c0_i32, %c0_i32_0 : i32, i32
  }
  func.func @transform_5(%arg0: i32) -> (i32, i32) {
    %c0_i32 = arith.constant 0 : i32
    %c0_i32_0 = arith.constant 0 : i32
    %c0_i32_1 = arith.constant 0 : i32
    return %c0_i32, %c0_i32_0 : i32, i32
  }
  func.func @transform_6(%arg0: i32) -> (i32, i32) {
    %c0_i32 = arith.constant 0 : i32
    %c0_i32_0 = arith.constant 0 : i32
    %c0_i32_1 = arith.constant 0 : i32
    return %c0_i32, %c0_i32_0 : i32, i32
  }
  func.func @transform_7(%arg0: i32) -> (i32, i32) {
    %c0_i32 = arith.constant 0 : i32
    %c0_i32_0 = arith.constant 0 : i32
    return %arg0, %c0_i32 : i32, i32
  }
}

</mosaic_0001>

<bundles_post_ra>
// kernel: tpu_custom_call.1
= control target key start
LH: loop header
LB: loop body
LE: loop exit
PB: predicated region body
PF: predicated region fallthrough
CT: control target
= control target key end

     0   :  { %12 = vsyncpa [#allocation3], 0  ;;  %s1670_s0 = inlined_call_operand.hbm [shape: bf16[32,128], index: 0, kind: input, shape index: {}]   ;;  %s1671_s1 = inlined_call_operand.hbm [shape: bf16[128,128], index: 1, kind: input, shape index: {}]   ;;  %s1672_s2 = inlined_call_operand.vmem [shape: f32[1,128], index: 2, kind: input, shape index: {}]   ;;  %s1673_s3 = inlined_call_operand.hbm [shape: bf16[128,128], index: 3, kind: input, shape index: {}]   ;;  %s1674_s4 = inlined_call_operand.vmem [shape: f32[1,128], index: 4, kind: input, shape index: {}]   ;;  %s1675_s5 = inlined_call_operand.hbm [shape: bf16[128,128], index: 5, kind: input, shape index: {}]   ;;  %s1676_s6 = inlined_call_operand.vmem [shape: f32[1,128], index: 6, kind: input, shape index: {}]   ;;  %s1677_s7 = inlined_call_operand.hbm [shape: bf16[32,128], index: 7, kind: output, shape index: {}]  }
   0x1   :  { %14 = vsyncpa [#allocation3 + $0x1], 0 }
   0x2   :  { %15 = vsyncpa [#allocation6], 0 }
   0x3   :  { %16 = vsyncpa [#allocation9], 0 }
   0x4   :  { %17 = vsyncpa [#allocation4], 0 }
   0x5   :  { %19 = vsyncpa [#allocation4 + $0x1], 0  ;;  %s1350_s24 = smov 0   ;;  %s1352_s25 = smov 0  }
   0x6   :  { %s1354_s26 = smov 0   ;;  %s1356_s27 = smov 0  }
   0x7 LB: > { %s1371_s28 = sadd.s32 4294967295, %s1295_s27   ;;  %s836_s29 = sadd.s32 4294967294, %s1295_s27   ;;  %s1295_s27 = sphi %s1356_s27, %s1703_s27   ;;  %s1291_s26 = sphi %s1354_s26, %s1702_s26   ;;  %s1287_s25 = sphi %s1352_s25, %s1701_s25   ;;  %s1283_s24 = sphi %s1350_s24, %s1700_s24  }
   0x8   : > { %p45_p0 = scmp.ne.s32.totalorder %s1287_s25, %s1283_s24  ;;  %p1678_p1 = scmp.eq.s32.totalorder %s1371_s28, 0 }
   0x9   : > { %p201_p3 = scmp.eq.s32.totalorder %s836_s29, 1  ;;  %p837_p5 = scmp.ge.s32.totalorder %s1295_s27, 1 }
   0xa   : > { %p1380_p4 = por %p1678_p1, %p45_p0  ;;  %p208_p7 = scmp.lt.s32.totalorder %s1295_s27, 3 }
   0xb   : > { %p1385_p6 = por %p201_p3, %p45_p0  ;;  %s1297_s10 = smov [#allocation5]  }
   0xc   : > { %s1682_s30 = scalar_select %p1380_p4, 1, 0 }
   0xd   : > { %s1683_s8 = scalar_select %p1385_p6, 1, 0 }
   0xe   : > { %p1390_p8 = pnand %p837_p5, %p208_p7  ;;  %s220_s11 = sshll.u32 %s1297_s10, 4  ;;  %s1394_s11 = int_to_ptr.vmem [resolvable:$true] %s220_s11 }
   0xf   : > { %1684 = sst [smem:[#allocation15_spill]] %s1683_s8  ;;  %s1298_s13 = smov [#allocation7]  }
  0x10   : > { %s1685_s9 = scalar_select %p1390_p8, 1, 0 }
  0x11   : > { %p998_p9 = pneg %p1390_p8  ;;  %s236_s14 = sshll.u32 %s1298_s13, 4  ;;  %s1405_s14 = int_to_ptr.vmem [resolvable:$true] %s236_s14 }
  0x12   : > { %s1299_s15 = smov [#allocation8]   ;;  %s1107_s19 = scalar_lea.hbm %s1671_s1, 1024 }
  0x13   : > { %p1401_p11 = pnand %p998_p9, %p1678_p1  ;;  %s1407_s16 = sshll.u32 %s1299_s15, 4  ;;  %s253_s16 = int_to_ptr.vmem [resolvable:$true] %s1407_s16 }
  0x14   : > { %p1108_p12 = scmp.ne.s32.totalorder %s1671_s1, %s1107_s19  ;;  %p1114_p5 = scmp.lt.u32.totalorder %s1107_s19, %s1671_s1 }
  0x15   : > { %p1417_p13 = pneg %p1401_p11 }
  0x17   : > { %p1110_p0 = pnand %p1417_p13, %p1108_p12 }
  0x19   : > { %p1111_p3 = pneg %p1110_p0 }
  0x1b   : > { %p1116_p7 = pnand %p1114_p5, %p1111_p3 }
  0x1d   : > { %1119 = shalt.err (!%p1116_p7)
}
  0x1e   : > { %s1120_s10 = scalar_lea.vmem %s1394_s11, 1024  ;;  %p1128_p2 = scmp.lt.s32.totalorder %s1394_s11, %s1394_s11 }
  0x1f   : > { %p1121_p9 = scmp.ne.s32.totalorder %s1394_s11, %s1120_s10  ;;  %p1129_p6 = scmp.lt.s32.totalorder %s1120_s10, %s1120_s10 }
  0x21   : > { %p1123_p10 = pnand %p1121_p9, %p1417_p13  ;;  %p1130_p12 = por %p1129_p6, %p1128_p2 }
  0x23   : > { %p1124_p1 = pneg %p1123_p10 }
  0x25   : > { %p1131_p0 = pnand %p1130_p12, %p1124_p1 }
  0x27   : > { %1134 = shalt.err (!%p1131_p0)
}
  0x28   : > { %s1300_s13 = smov 64   ;;  %s1301_s15 = smov 4  }
  0x29   : > { %1001 = dma.hbm_to_vmem [thread:$0]  (!%p1401_p11), %s1671_s1, 1024, %s1394_s11, [#allocation6], %s1300_s13, %s1300_s13, %s1301_s15  }
  0x2a   : > { %s1135_s21 = scalar_lea.hbm %s1673_s3, 1024 }
  0x2b   : > { %p1136_p1 = scmp.ne.s32.totalorder %s1673_s3, %s1135_s21  ;;  %p1142_p10 = scmp.lt.u32.totalorder %s1135_s21, %s1673_s3 }
  0x2d   : > { %p1138_p2 = pnand %p1136_p1, %p1417_p13 }
  0x2f   : > { %p1139_p6 = pneg %p1138_p2 }
  0x31   : > { %p1144_p3 = pnand %p1142_p10, %p1139_p6 }
  0x33   : > { %1147 = shalt.err (!%p1144_p3)
}
  0x34   : > { %s1148_s11 = scalar_lea.vmem %s1405_s14, 1024  ;;  %p1156_p12 = scmp.lt.s32.totalorder %s1405_s14, %s1405_s14 }
  0x35   : > { %p1149_p5 = scmp.ne.s32.totalorder %s1405_s14, %s1148_s11  ;;  %p1157_p0 = scmp.lt.s32.totalorder %s1148_s11, %s1148_s11 }
  0x37   : > { %p1151_p7 = pnand %p1149_p5, %p1417_p13  ;;  %p1158_p1 = por %p1157_p0, %p1156_p12 }
  0x39   : > { %p1152_p9 = pneg %p1151_p7 }
  0x3b   : > { %p1159_p2 = pnand %p1158_p1, %p1152_p9 }
  0x3d   : > { %1162 = shalt.err (!%p1159_p2)
}
  0x3e   : > { %1004 = dma.hbm_to_vmem [thread:$0]  (!%p1401_p11), %s1673_s3, 1024, %s1405_s14, [#allocation6], %s1300_s13, %s1300_s13, %s1301_s15  }
  0x3f   : > { %s1163_s20 = scalar_lea.hbm %s1675_s5, 1024 }
  0x40   : > { %p1164_p6 = scmp.ne.s32.totalorder %s1675_s5, %s1163_s20  ;;  %p1170_p5 = scmp.lt.u32.totalorder %s1163_s20, %s1675_s5 }
  0x42   : > { %p1166_p10 = pnand %p1164_p6, %p1417_p13 }
  0x44   : > { %p1167_p3 = pneg %p1166_p10 }
  0x46   : > { %p1172_p7 = pnand %p1170_p5, %p1167_p3 }
  0x48   : > { %1175 = shalt.err (!%p1172_p7)
}
  0x49   : > { %s1176_s11 = scalar_lea.vmem %s253_s16, 1024  ;;  %p1184_p1 = scmp.lt.s32.totalorder %s253_s16, %s253_s16 }
  0x4a   : > { %p1177_p9 = scmp.ne.s32.totalorder %s253_s16, %s1176_s11  ;;  %p1185_p2 = scmp.lt.s32.totalorder %s1176_s11, %s1176_s11 }
  0x4c   : > { %p1179_p12 = pnand %p1177_p9, %p1417_p13  ;;  %p1186_p4 = por %p1185_p2, %p1184_p1 }
  0x4e   : > { %p1180_p0 = pneg %p1179_p12 }
  0x50   : > { %p1187_p8 = pnand %p1186_p4, %p1180_p0 }
  0x52   : > { %1190 = shalt.err (!%p1187_p8)
}
  0x53   : > { %1007 = dma.hbm_to_vmem [thread:$0]  (!%p1401_p11), %s1675_s5, 1024, %s253_s16, [#allocation9], %s1300_s13, %s1300_s13, %s1301_s15  }
  0x54   : > { %s1490_s22 = sadd.s32 1, %s1295_s27   ;;  %s32_s17 = sadd.s32 1, %s1291_s26 }
  0x55   : > { %s29_s12 = ssub.s32 %s1295_s27, %s1490_s22  ;;  %p39_p8 = scmp.ne.s32.totalorder %s1291_s26, %s1287_s25 }
  0x56   : > { %p30_p4 = scmp.eq.s32.totalorder %s29_s12, 0  ;;  %p40_p13 = scmp.eq.s32.totalorder %s1295_s27, 0 }
  0x57   : > { %p1019_p6 = scmp.lt.s32.totalorder %s1295_s27, 2  ;;  %p1688_p3 = scmp.eq.s32.totalorder %s1371_s28, 1 }
  0x58   : > { %s1500_s18 = scalar_select %p30_p4, %s1291_s26, %s32_s17  }
  0x59   : > { %p41_p10 = por %p40_p13, %p39_p8  ;;  %p1504_p5 = por %p1688_p3, %p39_p8 }
  0x5a   : > { %s269_s20 = sand.u32 1, %s1291_s26   ;;  %s886_s21 = sshll.u32 %s1295_s27, 7 }
  0x5b   : > { %s842_s16 = sshll.u32 %s269_s20, 3  ;;  %s1513_s10 = scalar_lea.hbm %s1670_s0, %s886_s21 }
  0x5c   : > { %s273_s11 = scalar_lea.vmem [#allocation2], %s842_s16  ;;  %p1515_p11 = pnand %p1019_p6, %p41_p10 }
  0x5d   : > { %s280_s14 = sshll.u32 %s273_s11, 4  ;;  %s1521_s12 = scalar_lea.sflag [#allocation3], %s269_s20  ;;  %s1519_s14 = int_to_ptr.vmem [resolvable:$true] %s280_s14 }
  0x5e   : > { %s1191_s17 = scalar_lea.hbm %s1513_s10, 128  ;;  %p1193_p9 = pneg %p1515_p11 }
  0x5f   : > { %p1192_p7 = scmp.ne.s32.totalorder %s1513_s10, %s1191_s17  ;;  %s1196_s23 = scalar_lea.hbm %s1670_s0, 256 }
  0x60   : > { %p1197_p1 = scmp.lt.u32.totalorder %s1513_s10, %s1670_s0  ;;  %p1198_p2 = scmp.lt.u32.totalorder %s1196_s23, %s1191_s17 }
  0x61   : > { %p1194_p12 = pnand %p1193_p9, %p1192_p7  ;;  %p1200_p8 = scmp.lt.u32.totalorder %s1191_s17, %s1513_s10 }
  0x62   : > { %p1199_p4 = por %p1198_p2, %p1197_p1 }
  0x63   : > { %p1195_p0 = pneg %p1194_p12 }
  0x64   : > { %p1201_p13 = por %p1200_p8, %p1199_p4 }
  0x66   : > { %p1202_p6 = pnand %p1201_p13, %p1195_p0 }
  0x68   : > { %1205 = shalt.err (!%p1202_p6)
}
  0x69   : > { %s1206_s20 = scalar_lea.vmem %s1519_s14, 128  ;;  %s1302_s21 = smov [#allocation2]  }
  0x6a   : > { %p1207_p10 = scmp.ne.s32.totalorder %s1519_s14, %s1206_s20  ;;  %s1211_s16 = sshll.u32 %s1302_s21, 4  ;;  %s1212_s16 = int_to_ptr.vmem [resolvable:$false] %s1211_s16 }
  0x6b   : > { %s1213_s29 = scalar_lea.vmem %s1212_s16, 256  ;;  %p1214_p12 = scmp.lt.s32.totalorder %s1519_s14, %s1212_s16 }
  0x6c   : > { %p1209_p3 = pnand %p1207_p10, %p1193_p9  ;;  %p1215_p1 = scmp.lt.s32.totalorder %s1213_s29, %s1206_s20 }
  0x6e   : > { %p1210_p7 = pneg %p1209_p3  ;;  %p1216_p2 = por %p1215_p1, %p1214_p12 }
  0x70   : > { %p1217_p4 = pnand %p1216_p2, %p1210_p7 }
  0x72   : > { %1220 = shalt.err (!%p1217_p4)
}
  0x73   : > { %1011 = dma.hbm_to_vmem [thread:$0]  (!%p1515_p11), %s1513_s10, 128, %s1519_s14, %s1521_s12, %s1300_s13, %s1300_s13, %s1301_s15  }
  0x74   : > { %p1691_p9 = scmp.ne.s32.totalorder %s1685_s9, 0 }
  0x75   : > { %s1555_s17 = sand.u32 (!%p1691_p9), 1, %s1287_s25   ;;  %p1692_p0 = scmp.ne.s32.totalorder (!%p1691_p9), %s1682_s30, 0 }
  0x76   : > { %292 = sbr.rel (%p1691_p9) target bundleno = 1201 (0x4b1), region = 48  ;;  %s846_s23 = sshll.u32 (!%p1691_p9), %s1555_s17, 3 }
  0x77   : > { %s295_s11 = scalar_lea.sflag (!%p1691_p9), [#allocation3], %s1555_s17  ;;  %s1561_s8 = scalar_lea.vmem (!%p1691_p9), [#allocation2], %s846_s23 }
  0x7d   : > { %1266 = dma.done.wait (%p1692_p0), %s295_s11, 128  }
  0x7e   : > { %1268 = vsyncadd (%p1692_p0), %s295_s11, 4294967168  ;;  %p1693_p11 = scmp.eq.s32.totalorder %s1371_s28, 0 }
  0x80   : > { %1270 = dma.done.wait (%p1693_p11), [#allocation6], 2048   ;;  %p1694_p8 = pmov %p1693_p11 }
  0x82   : > { %1272 = vsyncadd (%p1694_p8), [#allocation6], 4294965248  ;;  %p1695_p13 = pmov %p1694_p8 }
  0x83   : > { %p1696_p6 = pmov %p1694_p8 }
  0x84   : > { %1274 = dma.done.wait (%p1695_p13), [#allocation9], 1024  }
  0x85   : > { %1276 = vsyncadd (%p1696_p6), [#allocation9], 4294966272  ;;  %v1303_v0 = vmov 0.0   ;;  %vm1304_vm0 = vmmov 0   ;;  %v1082_v1 = vld [vmem:[#allocation5] sm:$0xff]   ;;  %v1083_v2 = vld [vmem:[#allocation5 + $0x8] sm:$0xff]  }
  0x86   : > { %922 = vmatprep.subr.bf16.mxu0 %v1303_v0  ;;  %938 = vmatprep.mubr.msk.bf16.mxu0 %vm1304_vm0, %v1303_v0  ;;  %v1084_v3 = vld [vmem:[#allocation5 + $0x10] sm:$0xff]   ;;  %v1085_v4 = vld [vmem:[#allocation5 + $0x18] sm:$0xff]   ;;  %v1086_v5 = vld [vmem:[#allocation5 + $0x20] sm:$0xff]   ;;  %s1305_s13 = smov 64   ;;  %s1306_s15 = smov 32  }
  0x87   : > { %942 = vmatprep.subr.bf16.mxu1 %v1303_v0  ;;  %958 = vmatprep.mubr.msk.bf16.mxu1 %vm1304_vm0, %v1303_v0  ;;  %v1087_v6 = vld [vmem:[#allocation5 + $0x28] sm:$0xff]   ;;  %v1088_v7 = vld [vmem:[#allocation5 + $0x30] sm:$0xff]   ;;  %v1089_v8 = vld [vmem:[#allocation5 + $0x38] sm:$0xff]   ;;  %s1307_s10 = smov 16   ;;  %s340_s16 = scalar_lea.vmem [#allocation10], %s846_s23 }
  0x88   : > { %923 = vmatpush3.bf16.msra.mxu0 %v1082_v1  ;;  %v1090_v9 = vld [vmem:[%s1561_s8] sm:$0xff]   ;;  %v1091_v19 = vld [vmem:[#allocation7] sm:$0xff]   ;;  %v1092_v22 = vld [vmem:[#allocation7 + $0x8] sm:$0xff]   ;;  %s734_s29 = sshll.u32 %s340_s16, 4  ;;  %s889_s11 = sshll.u32 %s1371_s28, 7  ;;  %s1619_s29 = int_to_ptr.vmem [resolvable:$true] %s734_s29 }
  0x89   : > { %924 = vmatprep.subr.bf16.mxu0 %v1303_v0  ;;  %v851_v10 = vld [vmem:[%s1672_s2] ss:$0 sm:$0xff]  ;;  %943 = vmatpush3.bf16.msra.mxu1 %v1091_v19  ;;  %v1094_v27 = vld [vmem:[#allocation7 + $0x18] sm:$0xff]   ;;  %v1095_v28 = vld [vmem:[#allocation7 + $0x20] sm:$0xff]   ;;  %s1624_s9 = scalar_lea.hbm %s1677_s7, %s889_s11  ;;  %s1221_s23 = scalar_lea.vmem %s1619_s29, 128 }
  0x8a   : > { %944 = vmatprep.subr.bf16.mxu1 %v1303_v0  ;;  %v1093_v26 = vld [vmem:[#allocation7 + $0x10] sm:$0xff]   ;;  %v1096_v29 = vld [vmem:[#allocation7 + $0x28] sm:$0xff]   ;;  %v1098_v31 = vld [vmem:[#allocation7 + $0x38] sm:$0xff]   ;;  %p1222_p10 = scmp.ne.s32.totalorder %s1619_s29, %s1221_s23  ;;  %s1308_s28 = smov [#allocation10]  }
  0x8b   : > { %v1097_v30 = vld [vmem:[#allocation7 + $0x30] sm:$0xff]   ;;  %v1099_v33 = vld [vmem:[#allocation8] sm:$0xff]   ;;  %v1100_v36 = vld [vmem:[#allocation8 + $0x8] sm:$0xff]  }
  0x8c   : > { %925 = vmatpush3.bf16.msra.mxu0 %v1083_v2  ;;  %v1101_v40 = vld [vmem:[#allocation8 + $0x10] sm:$0xff]   ;;  %v1102_v41 = vld [vmem:[#allocation8 + $0x18] sm:$0xff]   ;;  %v1103_v42 = vld [vmem:[#allocation8 + $0x20] sm:$0xff]   ;;  %p1223_p3 = pnand %p1222_p10, %p1504_p5 }
  0x8d   : > { %926 = vmatprep.subr.bf16.mxu0 %v1303_v0  ;;  %945 = vmatpush3.bf16.msra.mxu1 %v1092_v22  ;;  %v1104_v43 = vld [vmem:[#allocation8 + $0x28] sm:$0xff]   ;;  %v1105_v50 = vld [vmem:[#allocation8 + $0x30] sm:$0xff]   ;;  %v1106_v51 = vld [vmem:[#allocation8 + $0x38] sm:$0xff]  }
  0x8e   : > { %946 = vmatprep.subr.bf16.mxu1 %v1303_v0  ;;  %v861_v52 = vld [vmem:[%s1674_s4] ss:$0 sm:$0xff]  ;;  %p1224_p7 = pneg %p1223_p3 }
  0x8f   : > { %v870_v62 = vld [vmem:[%s1676_s6] ss:$0 sm:$0xff] }
  0x90   : > { %927 = vmatpush3.bf16.msra.mxu0 %v1084_v3 }
  0x91   : > { %928 = vmatprep.subr.bf16.mxu0 %v1303_v0  ;;  %947 = vmatpush3.bf16.msra.mxu1 %v1093_v26 }
  0x92   : > { %948 = vmatprep.subr.bf16.mxu1 %v1303_v0 }
  0x94   : > { %929 = vmatpush3.bf16.msra.mxu0 %v1085_v4 }
  0x95   : > { %930 = vmatprep.subr.bf16.mxu0 %v1303_v0  ;;  %949 = vmatpush3.bf16.msra.mxu1 %v1094_v27 }
  0x96   : > { %950 = vmatprep.subr.bf16.mxu1 %v1303_v0 }
  0x98   : > { %931 = vmatpush3.bf16.msra.mxu0 %v1086_v5 }
  0x99   : > { %932 = vmatprep.subr.bf16.mxu0 %v1303_v0  ;;  %951 = vmatpush3.bf16.msra.mxu1 %v1095_v28 }
  0x9a   : > { %952 = vmatprep.subr.bf16.mxu1 %v1303_v0 }
  0x9c   : > { %933 = vmatpush3.bf16.msra.mxu0 %v1087_v6 }
  0x9d   : > { %934 = vmatprep.subr.bf16.mxu0 %v1303_v0  ;;  %953 = vmatpush3.bf16.msra.mxu1 %v1096_v29 }
  0x9e   : > { %954 = vmatprep.subr.bf16.mxu1 %v1303_v0 }
  0xa0   : > { %935 = vmatpush3.bf16.msra.mxu0 %v1088_v7 }
  0xa1   : > { %936 = vmatprep.subr.bf16.mxu0 %v1303_v0  ;;  %955 = vmatpush3.bf16.msra.mxu1 %v1097_v30 }
  0xa2   : > { %956 = vmatprep.subr.bf16.mxu1 %v1303_v0 }
  0xa4   : > { %937 = vmatpush3.bf16.msra.mxu0 %v1089_v8 }
  0xa5   : > { %962 = vmatprep.subr.bf16.mxu0 %v1303_v0  ;;  %957 = vmatpush3.bf16.msra.mxu1 %v1098_v31 }
  0xa7   : > { %939 = vmatmul.mubr.bf16.vlgmr.msra.gmra.mrb[0].mxu0 %v1090_v9 }
  0xa8   : > { %978 = vmatprep.mubr.msk.bf16.mxu0 %vm1304_vm0, %v1303_v0  ;;  %963 = vmatpush3.bf16.msra.mxu0 %v1099_v33 }
  0xa9   : > { %964 = vmatprep.subr.bf16.mxu0 %v1303_v0 }
  0xac   : > { %965 = vmatpush3.bf16.msra.mxu0 %v1100_v36 }
  0xad   : > { %966 = vmatprep.subr.bf16.mxu0 %v1303_v0 }
  0xb0   : > { %967 = vmatpush3.bf16.msra.mxu0 %v1101_v40 }
  0xb1   : > { %968 = vmatprep.subr.bf16.mxu0 %v1303_v0 }
  0xb4   : > { %969 = vmatpush3.bf16.msra.mxu0 %v1102_v41 }
  0xb5   : > { %970 = vmatprep.subr.bf16.mxu0 %v1303_v0 }
  0xb8   : > { %971 = vmatpush3.bf16.msra.mxu0 %v1103_v42 }
  0xb9   : > { %972 = vmatprep.subr.bf16.mxu0 %v1303_v0 }
  0xbc   : > { %973 = vmatpush3.bf16.msra.mxu0 %v1104_v43 }
  0xbd   : > { %974 = vmatprep.subr.bf16.mxu0 %v1303_v0 }
  0xc0   : > { %975 = vmatpush3.bf16.msra.mxu0 %v1105_v50 }
  0xc1   : > { %976 = vmatprep.subr.bf16.mxu0 %v1303_v0 }
  0xc4   : > { %977 = vmatpush3.bf16.msra.mxu0 %v1106_v51 }
 0x17a   : > { %v457_v11 = vpop.f32.mrb[0].mxu0 }
 0x17b   : > { %v940_v12 = vpop.f32.mrb[1].mxu0  ;;  %v458_v14 = vadd.f32 %v851_v10, %v457_v11 }
 0x17c   : > { %v460_v13 = vpop.f32.mrb[2].mxu0 }
 0x17d   : > { %v461_v15 = vadd.f32 %v851_v10, %v460_v13  ;;  %v941_v16 = vpop.f32.mrb[3].mxu0 }
 0x17f   : > { %v1067_v17 = vpack.i.bf16 %v461_v15, %v458_v14 }
 0x181   : > { %1068 = vrot.lane.b32.xlu0 %v1067_v17, %s1305_s13 }
 0x1f3   : > { %v1069_v18 = vpop.permute.xlu0 %1068 }
 0x1f4   : > { %v1071_v20 = vunpack.i.h.bf16 %v1069_v18  ;;  %v1070_v21 = vunpack.i.l.bf16 %v1069_v18 }
 0x1f6   : > { %v469_v23 = vmax.f32 %v461_v15, %v1071_v20  ;;  %v468_v24 = vmax.f32 %v458_v14, %v1070_v21 }
 0x1f8   : > { %v1072_v25 = vpack.i.bf16 %v469_v23, %v468_v24 }
 0x1fa   : > { %1073 = vrot.lane.b32.xlu0 %v1072_v25, %s1306_s15  ;;  %s721_s15 = scalar_lea.sflag [#allocation4], %s1555_s17 }
 0x26c   : > { %v1074_v32 = vpop.permute.xlu0 %1073 }
 0x26d   : > { %v1076_v34 = vunpack.i.h.bf16 %v1074_v32  ;;  %v1075_v35 = vunpack.i.l.bf16 %v1074_v32 }
 0x26f   : > { %v475_v37 = vmax.f32 %v469_v23, %v1076_v34  ;;  %v474_v38 = vmax.f32 %v468_v24, %v1075_v35 }
 0x271   : > { %v1077_v39 = vpack.i.bf16 %v475_v37, %v474_v38 }
 0x273   : > { %1078 = vrot.lane.b32.xlu1 %v1077_v39, %s1307_s10  ;;  %s1225_s10 = sshll.u32 %s1308_s28, 4  ;;  %s1226_s10 = int_to_ptr.vmem [resolvable:$false] %s1225_s10 }
 0x274   : > { %s1227_s14 = scalar_lea.vmem %s1226_s10, 256  ;;  %p1228_p12 = scmp.lt.s32.totalorder %s1619_s29, %s1226_s10 }
 0x275   : > { %p1229_p1 = scmp.lt.s32.totalorder %s1227_s14, %s1221_s23 }
 0x277   : > { %p1230_p2 = por %p1229_p1, %p1228_p12 }
 0x279   : > { %p1231_p4 = pnand %p1230_p2, %p1224_p7 }
 0x2e5   : > { %v1079_v44 = vpop.permute.xlu1 %1078 }
 0x2e6   : > { %v1081_v45 = vunpack.i.h.bf16 %v1079_v44  ;;  %v1080_v46 = vunpack.i.l.bf16 %v1079_v44 }
 0x2e8   : > { %v481_v47 = vmax.f32 %v475_v37, %v1081_v45  ;;  %v480_v48 = vmax.f32 %v474_v38, %v1080_v46 }
 0x2ea   : > { %v482_v49 = vpack.c.bf16 %v481_v47, %v480_v48 }
 0x2ec   : > { %959 = vmatmul.mubr.bf16.vlgmr.msra.gmra.mrb[0].mxu1 %v482_v49 }
 0x3bf   : > { %v588_v53 = vpop.f32.mrb[0].mxu1 }
 0x3c0   : > { %v589_v54 = vadd.f32 %v861_v52, %v588_v53  ;;  %v960_v55 = vpop.f32.mrb[1].mxu1 }
 0x3c1   : > { %v591_v56 = vpop.f32.mrb[2].mxu1 }
 0x3c2   : > { %v592_v57 = vadd.f32 %v861_v52, %v591_v56  ;;  %v961_v58 = vpop.f32.mrb[3].mxu1  ;;  %v595_v59 = vmax.f32 %v589_v54, 0.0 }
 0x3c4   : > { %v596_v60 = vmax.f32 %v592_v57, 0.0 }
 0x3c6   : > { %v597_v61 = vpack.c.bf16 %v596_v60, %v595_v59 }
 0x3c8   : > { %979 = vmatmul.mubr.bf16.vlgmr.msra.gmra.mrb[4].mxu0 %v597_v61 }
 0x49b   : > { %v703_v63 = vpop.f32.mrb[4].mxu0 }
 0x49c   : > { %v980_v0 = vpop.f32.mrb[5].mxu0  ;;  %v704_v2 = vadd.f32 %v870_v62, %v703_v63 }
 0x49d   : > { %v706_v1 = vpop.f32.mrb[6].mxu0 }
 0x49e   : > { %v707_v3 = vadd.f32 %v870_v62, %v706_v1  ;;  %v981_v4 = vpop.f32.mrb[7].mxu0 }
 0x4a0   : > { %v893_v5 = vpack.c.bf16 %v707_v3, %v704_v2 }
 0x4a2   : > { %894 = vst [vmem:[%s340_s16] sm:$0xff] %v893_v5  }
 0x4a3   : > { %1234 = shalt.err (!%p1231_p4)
}
 0x4a4   : > { %s1235_s12 = scalar_lea.hbm %s1624_s9, 128  ;;  %s1239_s16 = scalar_lea.hbm %s1677_s7, 256 }
 0x4a5   : > { %p1236_p9 = scmp.ne.s32.totalorder %s1624_s9, %s1235_s12  ;;  %p1240_p8 = scmp.lt.u32.totalorder %s1624_s9, %s1677_s7 }
 0x4a6   : > { %p1241_p13 = scmp.lt.u32.totalorder %s1239_s16, %s1235_s12  ;;  %p1243_p10 = scmp.lt.u32.totalorder %s1235_s12, %s1624_s9 }
 0x4a7   : > { %p1237_p0 = pnand %p1236_p9, %p1504_p5 }
 0x4a8   : > { %p1242_p6 = por %p1241_p13, %p1240_p8 }
 0x4a9   : > { %p1238_p11 = pneg %p1237_p0 }
 0x4aa   : > { %p1244_p3 = por %p1243_p10, %p1242_p6 }
 0x4ac   : > { %p1245_p7 = pnand %p1244_p3, %p1238_p11 }
 0x4ae   : > { %1248 = shalt.err (!%p1245_p7)
}
 0x4af   : > { %s1309_s30 = smov 4  }
 0x4b0   : > { %996 = dma.vmem_to_hbm [thread:$0]  (%p1504_p5), %s1619_s29, 128, %s1624_s9, %s721_s15, %s1305_s13, %s1305_s13, %s1309_s30  }
 0x4b1 PF: > { %s1697_s23 = sld [smem:[#allocation15_spill]]  ;;  %s749_s28 = sand.u32 1, %s1283_s24  }
 0x4b2   : > { %p1699_p1 = scmp.ge.s32.totalorder %s1295_s27, 2  ;;  %s750_s10 = scalar_lea.sflag [#allocation4], %s749_s28 }
 0x4b7   : > { %p1698_p12 = scmp.ne.s32.totalorder %s1697_s23, 0 }
 0x4b9   : > { %p1013_p2 = pnand %p1699_p1, %p1698_p12 }
 0x4bb   : > { %1278 = dma.done.wait (!%p1013_p2), %s750_s10, 128  }
 0x4bc   : > { %1280 = vsyncadd (!%p1013_p2), %s750_s10, 4294967168  ;;  %p22_p4 = scmp.ge.s32.totalorder %s1490_s22, 4   ;;  %s1700_s24 = smov %s1287_s25 }
 0x4bd   : > { %s1701_s25 = smov %s1291_s26  ;;  %s1702_s26 = smov %s1500_s18 }
 0x4be   : > { %s1703_s27 = smov %s1490_s22  ;;  %24 = sbr.rel (!%p22_p4) target bundleno = 7 (0x7), region = 105 }
 0x4c5   :  { %755 = vsyncpa [#allocation3], 1 }
 0x4c6   :  { %757 = vsyncpa [#allocation3 + $0x1], 1 }
 0x4c7   :  { %758 = vsyncpa [#allocation6], 1 }
 0x4c8   :  { %759 = vsyncpa [#allocation9], 1 }
 0x4c9   :  { %760 = vsyncpa [#allocation4], 1 }
 0x4ca   :  { %762 = vsyncpa [#allocation4 + $0x1], 1 }

</bundles_post_ra>
